<compile_context>
chip_gen: v7x
topology: tpu7x:2x2x1
jax: 0.10.0
libtpu: 0.0.40
codegen_flags: <defaults>
</compile_context>

<pallas_src>
import functools
import math

import jax
import jax.numpy as jnp
import numpy as np
from jax import lax
from jax.experimental import pallas as pl
from jax.experimental.pallas import tpu as pltpu

_LOG3 = math.log(3.0)
_INV_SQRT_2PI = 1.0 / math.sqrt(2.0 * math.pi)


# ----------------------------------------------------------------------------
# Kernel: one grid step == one (batch, head, L-tile)
# ----------------------------------------------------------------------------
def _anomaly_attention_kernel(q_ref, k_ref, v_ref, sig_ref, tab_ref,
                              v_out_ref, series_ref, prior_ref, sig_out_ref,
                              *, scale, apply_bias):
    # Blocks:
    #   q_ref   : (1, 1, TL, E)   native dtype (bf16 goes straight to the MXU)
    #   k_ref   : (1, 1, Sp, E)
    #   v_ref   : (1, 1, Sp, D)
    #   sig_ref : (1, 1, TL, 1)   raw sigma
    #   tab_ref : (2, TL, Sp) f32 [0] = additive score bias (-inf mask),
    #                             [1] = -0.5 * |i-j|^2
    #   outputs : V (1,1,TL,D), series/prior (1,1,TL,Sp), sigma (1,1,TL,1)
    q = q_ref[0, 0]                                    # (TL, E)
    k = k_ref[0, 0]                                    # (Sp, E)
    v = v_ref[0, 0]                                    # (Sp, D)

    # scores = q . k^T (contract E directly; no transpose), f32 accumulate.
    s = lax.dot_general(q, k, (((1,), (1,)), ((), ())),
                        preferred_element_type=jnp.float32)      # (TL, Sp)
    s = s * scale
    if apply_bias:
        s = s + tab_ref[0]        # -inf on causal-masked / padded key columns

    # numerically-stable softmax over keys
    m = jnp.max(s, axis=-1, keepdims=True)
    p = jnp.exp(s - m)
    denom = jnp.sum(p, axis=-1, keepdims=True)
    inv = pl.reciprocal(denom, approx=True)
    inv = inv * (2.0 - denom * inv)                    # one Newton refinement
    series = p * inv                                   # (TL, Sp)

    # sigma branch (per-row, (TL,1)): 3 ** (sigmoid(5x) + 1e-5) - 1
    sg = sig_ref[0, 0].astype(jnp.float32)
    sg = 1.0 / (1.0 + jnp.exp(-5.0 * sg)) + 1e-5
    sg = jnp.exp(sg * _LOG3) - 1.0                     # == 3**x - 1
    inv_sig = pl.reciprocal(sg, approx=False)          # (TL,1), exact
    inv_sig2 = inv_sig * inv_sig
    prior = (inv_sig * _INV_SQRT_2PI) * jnp.exp(tab_ref[1] * inv_sig2)

    out = jnp.dot(series.astype(v.dtype), v,
                  preferred_element_type=jnp.float32)  # (TL, D)

    v_out_ref[0, 0] = out.astype(v_out_ref.dtype)
    series_ref[0, 0] = series.astype(series_ref.dtype)
    prior_ref[0, 0] = prior.astype(prior_ref.dtype)
    sig_out_ref[0, 0] = sg.astype(sig_out_ref.dtype)

    # TODO(synk): nn.Dropout(attention_dropout) is identity for the default
    # p=0.0 and is not implemented for p>0.
    # TODO(synk): only the built-in TriangularCausalMask path is implemented;
    # a user-supplied attn_mask tensor is not.


# ----------------------------------------------------------------------------
# Tiling heuristics
# ----------------------------------------------------------------------------
def _round_up(x, m):
    return -(-x // m) * m


def _choose_s_pad(S):
    """Pad the key/output axis to a lane-dense multiple of 128 only when the
    padding overhead is modest (<= 50%); padding e.g. S=8 -> 128 would inflate
    store traffic instead of helping."""
    sp = _round_up(S, 128)
    if sp != S and (sp - S) * 2 <= S:
        return sp
    return S


def _choose_tl(L):
    """L-tile: full window for short windows, else a divisor; keeps the block
    working set bounded on v7x's 64 MiB VMEM."""
    if L <= 256:
        return L
    for tl in (512, 256, 128):
        if L % tl == 0:
            return tl
    return L


# ----------------------------------------------------------------------------
# Wrapper
# ----------------------------------------------------------------------------
def anomaly_attention(queries, keys, values, sigma, *, scale=None,
                      mask_flag=True, output_attention=True,
                      attn_dtype=jnp.float32):
    B, L, H, E = queries.shape
    _, S, _, D = values.shape
    assert keys.shape == (B, S, H, E)
    assert sigma.shape == (B, L, H)
    assert L == S, "AnomalyAttention assumes L == S == win_size"
    scl = float(scale) if scale is not None else 1.0 / math.sqrt(E)

    S_pad = _choose_s_pad(S)
    TL = _choose_tl(L)
    nl = L // TL

    # Head-major, lane/sublane-dense layouts for the kernel.
    q_hm = jnp.transpose(queries, (0, 2, 1, 3))            # (B,H,L,E)
    k_hm = jnp.transpose(keys, (0, 2, 1, 3))               # (B,H,S,E)
    v_hm = jnp.transpose(values, (0, 2, 1, 3))             # (B,H,S,D)
    sig_hm = jnp.transpose(sigma, (0, 2, 1))[..., None]    # (B,H,L,1)
    if S_pad != S:
        pad = ((0, 0), (0, 0), (0, S_pad - S), (0, 0))
        k_hm = jnp.pad(k_hm, pad)
        v_hm = jnp.pad(v_hm, pad)

    # Hoisted per-(i,j) tables: additive score bias (causal + key-padding mask)
    # and -0.5*|i-j|^2 for the prior. Tiny HBM constant, DMA'd once per L-tile.
    li = np.arange(L)[:, None]
    sj = np.arange(S_pad)[None, :]
    dist = np.abs(li - sj).astype(np.float32)
    nhd2 = -0.5 * dist * dist
    bias = np.zeros((L, S_pad), np.float32)
    if mask_flag:
        bias = np.where(sj > li, -np.inf, bias)
    if S_pad != S:
        bias = np.where(sj >= S, -np.inf, bias)
    tables = jnp.asarray(np.stack([bias, nhd2]).astype(np.float32))
    apply_bias = bool(mask_flag or (S_pad != S))

    # Explicit VMEM budget (double-buffered block working set + headroom),
    # capped at v7x's 64 MiB physical VMEM.
    in_b = jnp.dtype(queries.dtype).itemsize
    v_b = jnp.dtype(values.dtype).itemsize
    a_b = jnp.dtype(attn_dtype).itemsize
    sg_b = jnp.dtype(sigma.dtype).itemsize
    work = 2 * ((TL * E + S_pad * E) * in_b + S_pad * D * v_b
                + TL * sg_b + 2 * TL * S_pad * 4
                + TL * D * v_b + 2 * TL * S_pad * a_b + TL * 4)
    vmem_limit = int(min(64 * 2**20, max(32 * 2**20, work + 8 * 2**20)))

    kernel = functools.partial(_anomaly_attention_kernel,
                               scale=scl, apply_bias=apply_bias)

    out_shapes = (
        jax.ShapeDtypeStruct((B, H, L, D), values.dtype),      # V (head-major)
        jax.ShapeDtypeStruct((B, H, L, S_pad), attn_dtype),    # series
        jax.ShapeDtypeStruct((B, H, L, S_pad), attn_dtype),    # prior
        jax.ShapeDtypeStruct((B, H, L, 1), jnp.float32),       # sigma (narrow)
    )

    v_hm_out, series_p, prior_p, sig_small = pl.pallas_call(
        kernel,
        out_shape=out_shapes,
        grid=(B, H, nl),
        in_specs=[
            pl.BlockSpec((1, 1, TL, E), lambda b, h, l: (b, h, l, 0)),
            pl.BlockSpec((1, 1, S_pad, E), lambda b, h, l: (b, h, 0, 0)),
            pl.BlockSpec((1, 1, S_pad, D), lambda b, h, l: (b, h, 0, 0)),
            pl.BlockSpec((1, 1, TL, 1), lambda b, h, l: (b, h, l, 0)),
            pl.BlockSpec((2, TL, S_pad), lambda b, h, l: (0, l, 0)),
        ],
        out_specs=[
            pl.BlockSpec((1, 1, TL, D), lambda b, h, l: (b, h, l, 0)),
            pl.BlockSpec((1, 1, TL, S_pad), lambda b, h, l: (b, h, l, 0)),
            pl.BlockSpec((1, 1, TL, S_pad), lambda b, h, l: (b, h, l, 0)),
            pl.BlockSpec((1, 1, TL, 1), lambda b, h, l: (b, h, l, 0)),
        ],
        compiler_params=pltpu.CompilerParams(
            dimension_semantics=("parallel", "parallel", "parallel"),
            vmem_limit_bytes=vmem_limit),
    )(q_hm, k_hm, v_hm, sig_hm, tables)

    V = jnp.transpose(v_hm_out, (0, 2, 1, 3))       # (B,L,H,D) PyTorch layout
    series = series_p[..., :S] if S_pad != S else series_p
    prior = prior_p[..., :S] if S_pad != S else prior_p
    if output_attention:
        sig_full = jnp.broadcast_to(sig_small, (B, H, L, S))   # lazy broadcast
        return V, series, prior, sig_full
    return V, None


# ----------------------------------------------------------------------------
# Pure-JAX reference (mirrors the PyTorch module)
# ----------------------------------------------------------------------------
def anomaly_attention_ref(queries, keys, values, sigma, *, scale=None,
                          mask_flag=True):
    B, L, H, E = queries.shape
    _, S, _, D = values.shape
    scl = scale if scale is not None else 1.0 / math.sqrt(E)
    scores = jnp.einsum('blhe,bshe->bhls', queries, keys)
    if mask_flag:
        causal = jnp.triu(jnp.ones((L, S), dtype=bool), k=1)
        scores = jnp.where(causal[None, None], -jnp.inf, scores)
    attn = scl * scores
    sig = jnp.transpose(sigma, (0, 2, 1))                    # (B, H, L)
    sig = jax.nn.sigmoid(sig * 5.0) + 1e-5
    sig = jnp.exp(sig * math.log(3.0)) - 1.0                 # == 3**sig - 1
    sig = jnp.broadcast_to(sig[..., None], (B, H, L, S))
    idx = jnp.arange(L)
    dist = jnp.abs(idx[:, None] - idx[None, :]).astype(jnp.float32)
    prior = 1.0 / (math.sqrt(2.0 * math.pi) * sig) * jnp.exp(
        -(dist ** 2) / 2.0 / (sig ** 2))
    series = jax.nn.softmax(attn, axis=-1)
    V = jnp.einsum('bhls,bshd->blhd', series, values)
    return V, series, prior, sig


# ----------------------------------------------------------------------------
# Main
# ----------------------------------------------------------------------------
def _check(B, win_size, H, E, D, mask_flag, seed):
    key = jax.random.PRNGKey(seed)
    kq, kk, kv, ks = jax.random.split(key, 4)
    queries = jax.random.normal(kq, (B, win_size, H, E), jnp.float32)
    keys = jax.random.normal(kk, (B, win_size, H, E), jnp.float32)
    values = jax.random.normal(kv, (B, win_size, H, D), jnp.float32)
    sigma = jax.random.normal(ks, (B, win_size, H), jnp.float32)

    outs = anomaly_attention(queries, keys, values, sigma, scale=None,
                             mask_flag=mask_flag, output_attention=True)
    jax.block_until_ready(outs)
    V, series, prior, sig = outs

    V_r, series_r, prior_r, sig_r = anomaly_attention_ref(
        queries, keys, values, sigma, scale=None, mask_flag=mask_flag)

    assert V.shape == (B, win_size, H, D)
    assert series.shape == (B, H, win_size, win_size)
    assert prior.shape == (B, H, win_size, win_size)
    assert sig.shape == (B, H, win_size, win_size)

    for name, got, want in (("V", V, V_r), ("series", series, series_r),
                            ("prior", prior, prior_r), ("sigma", sig, sig_r)):
        got = np.asarray(got)
        want = np.asarray(want)
        assert np.allclose(got, want, atol=1e-4, rtol=1e-4), (
            name, mask_flag, win_size, float(np.max(np.abs(got - want))))


if __name__ == "__main__":
    # small shapes consistent with the module
    _check(B=2, win_size=8, H=2, E=16, D=16, mask_flag=True, seed=0)
    # no-mask path (apply_bias=False branch)
    _check(B=2, win_size=8, H=2, E=16, D=16, mask_flag=False, seed=0)
    # lane-padded path (S=96 -> 128) exercising the padded-key masking
    _check(B=1, win_size=96, H=2, E=16, D=16, mask_flag=True, seed=1)

    print("KERNEL_OK")
</pallas_src>

<mosaic_0001>
module attributes {stable_mosaic.version = 11 : i64} {
  func.func @_anomaly_attention_kernel(%arg0: i32, %arg1: i32, %arg2: i32, %arg3: memref<1x1x8x16xf32, #tpu.memory_space<vmem>>, %arg4: memref<1x1x8x16xf32, #tpu.memory_space<vmem>>, %arg5: memref<1x1x8x16xf32, #tpu.memory_space<vmem>>, %arg6: memref<1x1x8x1xf32, #tpu.memory_space<vmem>>, %arg7: memref<2x8x8xf32, #tpu.memory_space<vmem>>, %arg8: memref<1x1x8x16xf32, #tpu.memory_space<vmem>>, %arg9: memref<1x1x8x8xf32, #tpu.memory_space<vmem>>, %arg10: memref<1x1x8x8xf32, #tpu.memory_space<vmem>>, %arg11: memref<1x1x8x1xf32, #tpu.memory_space<vmem>>) attributes {dimension_semantics = [#tpu.dimension_semantics<parallel>, #tpu.dimension_semantics<parallel>, #tpu.dimension_semantics<parallel>], iteration_bounds = array<i64: 2, 2, 1>, scalar_prefetch = 0 : i64, scratch_operands = 0 : i64, tpu.core_type = #tpu.core_type<tc>, window_params = [{transform_indices = @transform_0, window_bounds = array<i64: 1, 1, 8, 16>}, {transform_indices = @transform_1, window_bounds = array<i64: 1, 1, 8, 16>}, {transform_indices = @transform_2, window_bounds = array<i64: 1, 1, 8, 16>}, {transform_indices = @transform_3, window_bounds = array<i64: 1, 1, 8, 1>}, {transform_indices = @transform_4, window_bounds = array<i64: 2, 8, 8>}, {transform_indices = @transform_5, window_bounds = array<i64: 1, 1, 8, 16>}, {transform_indices = @transform_6, window_bounds = array<i64: 1, 1, 8, 8>}, {transform_indices = @transform_7, window_bounds = array<i64: 1, 1, 8, 8>}, {transform_indices = @transform_8, window_bounds = array<i64: 1, 1, 8, 1>}]} {
    %c0 = arith.constant 0 : index
    %c0_0 = arith.constant 0 : index
    %c0_1 = arith.constant 0 : index
    %c0_2 = arith.constant 0 : index
    %0 = vector.load %arg3[%c0, %c0_0, %c0_1, %c0_2] : memref<1x1x8x16xf32, #tpu.memory_space<vmem>>, vector<1x1x8x16xf32>
    %1 = vector.shape_cast %0 : vector<1x1x8x16xf32> to vector<8x16xf32>
    %c0_3 = arith.constant 0 : index
    %c0_4 = arith.constant 0 : index
    %c0_5 = arith.constant 0 : index
    %c0_6 = arith.constant 0 : index
    %2 = vector.load %arg4[%c0_3, %c0_4, %c0_5, %c0_6] : memref<1x1x8x16xf32, #tpu.memory_space<vmem>>, vector<1x1x8x16xf32>
    %3 = vector.shape_cast %2 : vector<1x1x8x16xf32> to vector<8x16xf32>
    %c0_7 = arith.constant 0 : index
    %c0_8 = arith.constant 0 : index
    %c0_9 = arith.constant 0 : index
    %c0_10 = arith.constant 0 : index
    %4 = vector.load %arg5[%c0_7, %c0_8, %c0_9, %c0_10] : memref<1x1x8x16xf32, #tpu.memory_space<vmem>>, vector<1x1x8x16xf32>
    %5 = vector.shape_cast %4 : vector<1x1x8x16xf32> to vector<8x16xf32>
    %cst = arith.constant dense<0.000000e+00> : vector<8x8xf32>
    %6 = tpu.matmul %1, %3, %cst {dimension_numbers = #tpu.dot_dimension_numbers<[1], [1], [0], [0], [0, 0, 1, 0], [], []>} : vector<8x16xf32>, vector<8x16xf32>, vector<8x8xf32> -> vector<8x8xf32>
    %cst_11 = arith.constant 2.500000e-01 : f32
    %7 = vector.broadcast %cst_11 : f32 to vector<8x8xf32>
    %8 = arith.mulf %6, %7 : vector<8x8xf32>
    %c0_12 = arith.constant 0 : index
    %c0_13 = arith.constant 0 : index
    %c0_14 = arith.constant 0 : index
    %9 = vector.load %arg7[%c0_12, %c0_13, %c0_14] : memref<2x8x8xf32, #tpu.memory_space<vmem>>, vector<1x8x8xf32>
    %10 = vector.shape_cast %9 : vector<1x8x8xf32> to vector<8x8xf32>
    %11 = arith.addf %8, %10 : vector<8x8xf32>
    %cst_15 = arith.constant dense<0xFF800000> : vector<8xf32>
    %12 = vector.multi_reduction <maximumf>, %11, %cst_15 [1] : vector<8x8xf32> to vector<8xf32>
    %13 = vector.shape_cast %12 : vector<8xf32> to vector<8x1xf32>
    %14 = vector.broadcast %13 : vector<8x1xf32> to vector<8x8xf32>
    %15 = arith.subf %11, %14 : vector<8x8xf32>
    %16 = math.exp %15 : vector<8x8xf32>
    %cst_16 = arith.constant dense<0.000000e+00> : vector<8xf32>
    %17 = vector.multi_reduction <add>, %16, %cst_16 [1] : vector<8x8xf32> to vector<8xf32>
    %18 = vector.shape_cast %17 : vector<8xf32> to vector<8x1xf32>
    %19 = tpu.reciprocal %18 {approx = true} : vector<8x1xf32> -> vector<8x1xf32>
    %20 = arith.mulf %18, %19 : vector<8x1xf32>
    %cst_17 = arith.constant 2.000000e+00 : f32
    %21 = vector.broadcast %cst_17 : f32 to vector<8x1xf32>
    %22 = arith.subf %21, %20 : vector<8x1xf32>
    %23 = arith.mulf %19, %22 : vector<8x1xf32>
    %24 = vector.broadcast %23 : vector<8x1xf32> to vector<8x8xf32>
    %25 = arith.mulf %16, %24 : vector<8x8xf32>
    %c0_18 = arith.constant 0 : index
    %c0_19 = arith.constant 0 : index
    %c0_20 = arith.constant 0 : index
    %c0_21 = arith.constant 0 : index
    %26 = vector.load %arg6[%c0_18, %c0_19, %c0_20, %c0_21] : memref<1x1x8x1xf32, #tpu.memory_space<vmem>>, vector<1x1x8x1xf32>
    %27 = vector.shape_cast %26 : vector<1x1x8x1xf32> to vector<8x1xf32>
    %cst_22 = arith.constant -5.000000e+00 : f32
    %28 = vector.broadcast %cst_22 : f32 to vector<8x1xf32>
    %29 = arith.mulf %28, %27 : vector<8x1xf32>
    %30 = math.exp %29 : vector<8x1xf32>
    %cst_23 = arith.constant 1.000000e+00 : f32
    %31 = vector.broadcast %cst_23 : f32 to vector<8x1xf32>
    %32 = arith.addf %31, %30 : vector<8x1xf32>
    %cst_24 = arith.constant 1.000000e+00 : f32
    %33 = vector.broadcast %cst_24 : f32 to vector<8x1xf32>
    %34 = arith.divf %33, %32 : vector<8x1xf32>
    %cst_25 = arith.constant 9.99999974E-6 : f32
    %35 = vector.broadcast %cst_25 : f32 to vector<8x1xf32>
    %36 = arith.addf %34, %35 : vector<8x1xf32>
    %cst_26 = arith.constant 1.09861231 : f32
    %37 = vector.broadcast %cst_26 : f32 to vector<8x1xf32>
    %38 = arith.mulf %36, %37 : vector<8x1xf32>
    %39 = math.exp %38 : vector<8x1xf32>
    %cst_27 = arith.constant 1.000000e+00 : f32
    %40 = vector.broadcast %cst_27 : f32 to vector<8x1xf32>
    %41 = arith.subf %39, %40 : vector<8x1xf32>
    %42 = tpu.reciprocal %41 : vector<8x1xf32> -> vector<8x1xf32>
    %43 = arith.mulf %42, %42 : vector<8x1xf32>
    %cst_28 = arith.constant 0.398942292 : f32
    %44 = vector.broadcast %cst_28 : f32 to vector<8x1xf32>
    %45 = arith.mulf %42, %44 : vector<8x1xf32>
    %c1 = arith.constant 1 : index
    %c0_29 = arith.constant 0 : index
    %c0_30 = arith.constant 0 : index
    %46 = vector.load %arg7[%c1, %c0_29, %c0_30] : memref<2x8x8xf32, #tpu.memory_space<vmem>>, vector<1x8x8xf32>
    %47 = vector.shape_cast %46 : vector<1x8x8xf32> to vector<8x8xf32>
    %48 = vector.broadcast %43 : vector<8x1xf32> to vector<8x8xf32>
    %49 = arith.mulf %47, %48 : vector<8x8xf32>
    %50 = math.exp %49 : vector<8x8xf32>
    %51 = vector.broadcast %45 : vector<8x1xf32> to vector<8x8xf32>
    %52 = arith.mulf %51, %50 : vector<8x8xf32>
    %cst_31 = arith.constant dense<0.000000e+00> : vector<8x16xf32>
    %53 = tpu.matmul %25, %5, %cst_31 {dimension_numbers = #tpu.dot_dimension_numbers<[1], [0], [0], [1], [0, 0, 1, 1], [], []>} : vector<8x8xf32>, vector<8x16xf32>, vector<8x16xf32> -> vector<8x16xf32>
    %c0_32 = arith.constant 0 : index
    %c0_33 = arith.constant 0 : index
    %c0_34 = arith.constant 0 : index
    %c0_35 = arith.constant 0 : index
    %54 = vector.load %arg8[%c0_32, %c0_33, %c0_34, %c0_35] : memref<1x1x8x16xf32, #tpu.memory_space<vmem>>, vector<1x1x8x16xf32>
    %55 = vector.shape_cast %54 : vector<1x1x8x16xf32> to vector<8x16xf32>
    %56 = vector.shape_cast %53 : vector<8x16xf32> to vector<1x1x8x16xf32>
    tpu.vector_store %arg8[%c0_32, %c0_33, %c0_34, %c0_35], %56 {strides = array<i32>} : memref<1x1x8x16xf32, #tpu.memory_space<vmem>>, vector<1x1x8x16xf32>,
    %c0_36 = arith.constant 0 : index
    %c0_37 = arith.constant 0 : index
    %c0_38 = arith.constant 0 : index
    %c0_39 = arith.constant 0 : index
    %57 = vector.load %arg9[%c0_36, %c0_37, %c0_38, %c0_39] : memref<1x1x8x8xf32, #tpu.memory_space<vmem>>, vector<1x1x8x8xf32>
    %58 = vector.shape_cast %57 : vector<1x1x8x8xf32> to vector<8x8xf32>
    %59 = vector.shape_cast %25 : vector<8x8xf32> to vector<1x1x8x8xf32>
    tpu.vector_store %arg9[%c0_36, %c0_37, %c0_38, %c0_39], %59 {strides = array<i32>} : memref<1x1x8x8xf32, #tpu.memory_space<vmem>>, vector<1x1x8x8xf32>,
    %c0_40 = arith.constant 0 : index
    %c0_41 = arith.constant 0 : index
    %c0_42 = arith.constant 0 : index
    %c0_43 = arith.constant 0 : index
    %60 = vector.load %arg10[%c0_40, %c0_41, %c0_42, %c0_43] : memref<1x1x8x8xf32, #tpu.memory_space<vmem>>, vector<1x1x8x8xf32>
    %61 = vector.shape_cast %60 : vector<1x1x8x8xf32> to vector<8x8xf32>
    %62 = vector.shape_cast %52 : vector<8x8xf32> to vector<1x1x8x8xf32>
    tpu.vector_store %arg10[%c0_40, %c0_41, %c0_42, %c0_43], %62 {strides = array<i32>} : memref<1x1x8x8xf32, #tpu.memory_space<vmem>>, vector<1x1x8x8xf32>,
    %c0_44 = arith.constant 0 : index
    %c0_45 = arith.constant 0 : index
    %c0_46 = arith.constant 0 : index
    %c0_47 = arith.constant 0 : index
    %63 = vector.load %arg11[%c0_44, %c0_45, %c0_46, %c0_47] : memref<1x1x8x1xf32, #tpu.memory_space<vmem>>, vector<1x1x8x1xf32>
    %64 = vector.shape_cast %63 : vector<1x1x8x1xf32> to vector<8x1xf32>
    %65 = vector.shape_cast %41 : vector<8x1xf32> to vector<1x1x8x1xf32>
    tpu.vector_store %arg11[%c0_44, %c0_45, %c0_46, %c0_47], %65 {strides = array<i32>} : memref<1x1x8x1xf32, #tpu.memory_space<vmem>>, vector<1x1x8x1xf32>,
    return
  }
  func.func @transform_0(%arg0: i32, %arg1: i32, %arg2: i32) -> (i32, i32, i32, i32) {
    %c0_i32 = arith.constant 0 : i32
    %c0_i32_0 = arith.constant 0 : i32
    return %arg0, %arg1, %arg2, %c0_i32 : i32, i32, i32, i32
  }
  func.func @transform_1(%arg0: i32, %arg1: i32, %arg2: i32) -> (i32, i32, i32, i32) {
    %c0_i32 = arith.constant 0 : i32
    %c0_i32_0 = arith.constant 0 : i32
    %c0_i32_1 = arith.constant 0 : i32
    return %arg0, %arg1, %c0_i32, %c0_i32_0 : i32, i32, i32, i32
  }
  func.func @transform_2(%arg0: i32, %arg1: i32, %arg2: i32) -> (i32, i32, i32, i32) {
    %c0_i32 = arith.constant 0 : i32
    %c0_i32_0 = arith.constant 0 : i32
    %c0_i32_1 = arith.constant 0 : i32
    return %arg0, %arg1, %c0_i32, %c0_i32_0 : i32, i32, i32, i32
  }
  func.func @transform_3(%arg0: i32, %arg1: i32, %arg2: i32) -> (i32, i32, i32, i32) {
    %c0_i32 = arith.constant 0 : i32
    %c0_i32_0 = arith.constant 0 : i32
    return %arg0, %arg1, %arg2, %c0_i32 : i32, i32, i32, i32
  }
  func.func @transform_4(%arg0: i32, %arg1: i32, %arg2: i32) -> (i32, i32, i32) {
    %c0_i32 = arith.constant 0 : i32
    %c0_i32_0 = arith.constant 0 : i32
    %c0_i32_1 = arith.constant 0 : i32
    return %c0_i32, %arg2, %c0_i32_0 : i32, i32, i32
  }
  func.func @transform_5(%arg0: i32, %arg1: i32, %arg2: i32) -> (i32, i32, i32, i32) {
    %c0_i32 = arith.constant 0 : i32
    %c0_i32_0 = arith.constant 0 : i32
    return %arg0, %arg1, %arg2, %c0_i32 : i32, i32, i32, i32
  }
  func.func @transform_6(%arg0: i32, %arg1: i32, %arg2: i32) -> (i32, i32, i32, i32) {
    %c0_i32 = arith.constant 0 : i32
    %c0_i32_0 = arith.constant 0 : i32
    return %arg0, %arg1, %arg2, %c0_i32 : i32, i32, i32, i32
  }
  func.func @transform_7(%arg0: i32, %arg1: i32, %arg2: i32) -> (i32, i32, i32, i32) {
    %c0_i32 = arith.constant 0 : i32
    %c0_i32_0 = arith.constant 0 : i32
    return %arg0, %arg1, %arg2, %c0_i32 : i32, i32, i32, i32
  }
  func.func @transform_8(%arg0: i32, %arg1: i32, %arg2: i32) -> (i32, i32, i32, i32) {
    %c0_i32 = arith.constant 0 : i32
    %c0_i32_0 = arith.constant 0 : i32
    return %arg0, %arg1, %arg2, %c0_i32 : i32, i32, i32, i32
  }
}

</mosaic_0001>

<bundles_post_ra>
// kernel: tpu_custom_call.1
= control target key start
LH: loop header
LB: loop body
LE: loop exit
PB: predicated region body
PF: predicated region fallthrough
CT: control target
= control target key end

     0   :  { %s1894_s0 = inlined_call_operand.vmem [shape: f32[2,2,8,16], index: 0, kind: input, shape index: {}]   ;;  %s1895_s1 = inlined_call_operand.hbm [shape: f32[2,2,8,16], index: 1, kind: input, shape index: {}]   ;;  %s1896_s2 = inlined_call_operand.hbm [shape: f32[2,2,8,16], index: 2, kind: input, shape index: {}]   ;;  %s1897_s3 = inlined_call_operand.vmem [shape: f32[2,2,8,1], index: 3, kind: input, shape index: {}]   ;;  %s1898_s4 = inlined_call_operand.vmem [shape: f32[2,8,8], index: 4, kind: input, shape index: {}]   ;;  %s1899_s5 = inlined_call_operand.hbm [shape: f32[2,2,8,16], index: 5, kind: output, shape index: {0}]   ;;  %s1900_s6 = inlined_call_operand.hbm [shape: f32[2,2,8,8], index: 6, kind: output, shape index: {1}]   ;;  %s1901_s7 = inlined_call_operand.hbm [shape: f32[2,2,8,8], index: 7, kind: output, shape index: {2}]   ;;  %s1902_s8 = inlined_call_operand.vmem [shape: f32[2,2,8,1], index: 8, kind: output, shape index: {3}]  }
   0x1   :  { %1914 = sst [smem:[#allocation20_spill]] %s1895_s1 }
   0x2   :  { %1915 = sst [smem:[#allocation21_spill]] %s1899_s5 }
   0x3   :  { %14 = vsyncpa [#allocation3], 0 }
   0x4   :  { %16 = vsyncpa [#allocation3 + $0x1], 0 }
   0x5   :  { %17 = vsyncpa [#allocation6], 0 }
   0x6   :  { %19 = vsyncpa [#allocation6 + $0x1], 0 }
   0x7   :  { %20 = vsyncpa [#allocation4], 0 }
   0x8   :  { %22 = vsyncpa [#allocation4 + $0x1], 0 }
   0x9   :  { %23 = vsyncpa [#allocation9], 0 }
   0xa   :  { %25 = vsyncpa [#allocation9 + $0x1], 0  ;;  %s1547_s27 = smov 0   ;;  %s1549_s28 = smov 0  }
   0xb   :  { %s1551_s29 = smov 0   ;;  %s1553_s30 = smov 0  }
   0xc   :  { %s1555_s9 = smov 0   ;;  %s1557_s10 = smov 0  }
   0xd   :  { %s1559_s11 = smov 0   ;;  %s1561_s12 = smov 0  }
   0xe LB: > { %1916 = sst [smem:[#allocation15_spill]] %s1464_s27  ;;  %s1588_s13 = sadd.s32 4294967295, %s1492_s12   ;;  %s1492_s12 = sphi %s1561_s12, %s31_s12   ;;  %s1488_s11 = sphi %s1559_s11, %s1942_s11   ;;  %s1484_s10 = sphi %s1557_s10, %s1947_s10   ;;  %s1480_s9 = sphi %s1555_s9, %s1940_s9   ;;  %s1476_s30 = sphi %s1553_s30, %s1946_s30   ;;  %s1472_s29 = sphi %s1551_s29, %s1945_s29   ;;  %s1468_s28 = sphi %s1549_s28, %s1944_s28   ;;  %s1464_s27 = sphi %s1547_s27, %s1943_s27  }
   0xf   : > { %1917 = sst [smem:[#allocation16_spill]] %s1488_s11  ;;  %s1906_s14 = sadd.s32 4294967294, %s1492_s12  }
  0x10   : > { %s46_s15 = sadd.s32 1, %s1484_s10  ;;  %s50_s16 = sadd.s32 1, %s1488_s11 }
  0x11   : > { %p48_p0 = scmp.ge.s32.totalorder %s46_s15, 2  ;;  %s89_s17 = sadd.s32 1, %s1472_s29 }
  0x12   : > { %p96_p1 = scmp.ne.s32.totalorder %s1472_s29, %s1468_s28  ;;  %p97_p2 = scmp.eq.s32.totalorder %s1492_s12, 0 }
  0x13   : > { %s1949_s15 = smov (%p48_p0, %s46_s15), 0  ;;  %s1951_s16 = smov (!%p48_p0, %s50_s16), %s1488_s11 }
  0x14   : > { %1918 = sst [smem:[#allocation17_spill]] %s1949_s15  ;;  %s85_s18 = ssub.s32 %s1484_s10, %s1949_s15 }
  0x15   : > { %p1602_p3 = por %p97_p2, %p96_p1  ;;  %p52_p4 = scmp.ge.s32.totalorder %s1951_s16, 2 }
  0x16   : > { %p102_p5 = scmp.ne.s32.totalorder %s1468_s28, %s1464_s27  ;;  %p103_p6 = scmp.eq.s32.totalorder %s1588_s13, 0 }
  0x17   : > { %p214_p7 = scmp.eq.s32.totalorder %s1588_s13, 3  ;;  %s1953_s16 = smov (%p52_p4, %s1951_s16), 0 }
  0x18   : > { %1920 = sst [smem:[#allocation18_spill]] %s1953_s16  ;;  %p1612_p8 = por %p103_p6, %p102_p5 }
  0x19   : > { %p1616_p9 = por %p214_p7, %p96_p1  ;;  %s84_s22 = ssub.s32 %s1488_s11, %s1953_s16 }
  0x1a   : > { %s1921_s20 = scalar_select %p1612_p8, 1, 0 }
  0x1b   : > { %s1922_s21 = scalar_select %p1616_p9, 1, 0 }
  0x1c   : > { %p220_p10 = scmp.eq.s32.totalorder %s1906_s14, 3  ;;  %s86_s23 = sor.u32 %s85_s18, %s84_s22 }
  0x1d   : > { %p87_p11 = scmp.eq.s32.totalorder %s86_s23, 0  ;;  %p1185_p13 = scmp.lt.s32.totalorder %s1492_s12, 4 }
  0x1e   : > { %p1624_p12 = por %p220_p10, %p102_p5  ;;  %s1630_s25 = sand.u32 1, %s1472_s29  }
  0x1f   : > { %s1633_s26 = scalar_select %p87_p11, %s1472_s29, %s89_s17  }
  0x20   : > { %s1923_s24 = scalar_select %p1624_p12, 1, 0 }
  0x21   : > { %s1909_s16 = sshll.u32 %s1630_s25, 3  ;;  %s1111_s15 = sshll.u32 %s1488_s11, 1 }
  0x22   : > { %1924 = sst [smem:[#allocation19_spill]] %s1923_s24  ;;  %s1638_s27 = sadd.s32 %s1484_s10, %s1111_s15 }
  0x23   : > { %s355_s18 = scalar_lea.vmem [#allocation2], %s1909_s16  ;;  %s1910_s23 = sshll.u32 %s1638_s27, 7 }
  0x24   : > { %s364_s22 = sshll.u32 %s355_s18, 4  ;;  %s1925_s1 = sld [smem:[#allocation20_spill]]  ;;  %s1643_s22 = int_to_ptr.vmem [resolvable:$true] %s364_s22 }
  0x25   : > { %p1654_p0 = pnand %p1185_p13, %p1602_p3  ;;  %s352_s17 = scalar_lea.sflag [#allocation3], %s1630_s25 }
  0x27   : > { %p1272_p5 = pneg %p1654_p0 }
  0x2a   : > { %s1650_s5 = scalar_lea.hbm %s1925_s1, %s1910_s23  ;;  %s1275_s24 = scalar_lea.hbm %s1925_s1, 512 }
  0x2b   : > { %s1270_s18 = scalar_lea.hbm %s1650_s5, 128  ;;  %p1276_p3 = scmp.lt.u32.totalorder %s1650_s5, %s1925_s1 }
  0x2c   : > { %p1271_p4 = scmp.ne.s32.totalorder %s1650_s5, %s1270_s18  ;;  %p1277_p10 = scmp.lt.u32.totalorder %s1275_s24, %s1270_s18 }
  0x2d   : > { %p1279_p13 = scmp.lt.u32.totalorder %s1270_s18, %s1650_s5 }
  0x2e   : > { %p1273_p6 = pnand %p1272_p5, %p1271_p4  ;;  %p1278_p11 = por %p1277_p10, %p1276_p3 }
  0x30   : > { %p1274_p7 = pneg %p1273_p6  ;;  %p1280_p1 = por %p1279_p13, %p1278_p11 }
  0x32   : > { %p1281_p2 = pnand %p1280_p1, %p1274_p7 }
  0x34   : > { %1284 = shalt.err (!%p1281_p2)
}
  0x35   : > { %s1285_s11 = scalar_lea.vmem %s1643_s22, 128  ;;  %s1494_s14 = smov [#allocation2]  }
  0x36   : > { %p1286_p4 = scmp.ne.s32.totalorder %s1643_s22, %s1285_s11  ;;  %s1290_s19 = sshll.u32 %s1494_s14, 4  ;;  %s1291_s19 = int_to_ptr.vmem [resolvable:$false] %s1290_s19 }
  0x37   : > { %s1292_s16 = scalar_lea.vmem %s1291_s19, 256  ;;  %p1293_p9 = scmp.lt.s32.totalorder %s1643_s22, %s1291_s19 }
  0x38   : > { %p1288_p6 = pnand %p1286_p4, %p1272_p5  ;;  %p1294_p3 = scmp.lt.s32.totalorder %s1292_s16, %s1285_s11 }
  0x3a   : > { %p1289_p12 = pneg %p1288_p6  ;;  %p1295_p10 = por %p1294_p3, %p1293_p9 }
  0x3c   : > { %p1296_p11 = pnand %p1295_p10, %p1289_p12 }
  0x3e   : > { %1299 = shalt.err (!%p1296_p11)
}
  0x3f   : > { %1171 = dma.hbm_to_vmem [thread:$0]  (!%p1654_p0), %s1650_s5, 128, %s1643_s22, %s352_s17  }
  0x40   : > { %p1927_p1 = scmp.lt.s32.totalorder %s1492_s12, 5  ;;  %p1928_p2 = scmp.ge.s32.totalorder %s1492_s12, 1 }
  0x41   : > { %s1930_s11 = sshll.u32 %s1638_s27, 7  ;;  %s1931_s19 = sshll.u32 %s1630_s25, 3 }
  0x42   : > { %p1690_p7 = pnand %p1928_p2, %p1927_p1  ;;  %s1699_s14 = scalar_lea.hbm %s1896_s2, %s1930_s11 }
  0x43   : > { %s375_s16 = scalar_lea.vmem [#allocation5], %s1931_s19  ;;  %s372_s5 = scalar_lea.sflag [#allocation6], %s1630_s25 }
  0x44   : > { %s1929_s23 = scalar_select %p1690_p7, 1, 0 }
  0x45   : > { %s384_s1 = sshll.u32 %s375_s16, 4  ;;  %s1300_s22 = scalar_lea.hbm %s1699_s14, 128  ;;  %s385_s1 = int_to_ptr.vmem [resolvable:$true] %s384_s1 }
  0x46   : > { %p1301_p9 = scmp.ne.s32.totalorder %s1699_s14, %s1300_s22  ;;  %s1305_s11 = scalar_lea.hbm %s1896_s2, 512 }
  0x47   : > { %p1306_p4 = scmp.lt.u32.totalorder %s1699_s14, %s1896_s2  ;;  %p1307_p6 = scmp.lt.u32.totalorder %s1305_s11, %s1300_s22 }
  0x48   : > { %p1303_p12 = pnand %p1301_p9, %p1272_p5  ;;  %p1309_p10 = scmp.lt.u32.totalorder %s1300_s22, %s1699_s14 }
  0x49   : > { %p1308_p3 = por %p1307_p6, %p1306_p4 }
  0x4a   : > { %p1304_p13 = pneg %p1303_p12 }
  0x4b   : > { %p1310_p11 = por %p1309_p10, %p1308_p3 }
  0x4d   : > { %p1311_p1 = pnand %p1310_p11, %p1304_p13 }
  0x4f   : > { %1314 = shalt.err (!%p1311_p1)
}
  0x50   : > { %s1315_s25 = scalar_lea.vmem %s385_s1, 128  ;;  %s1495_s19 = smov [#allocation5]  }
  0x51   : > { %p1316_p2 = scmp.ne.s32.totalorder %s385_s1, %s1315_s25  ;;  %s1320_s16 = sshll.u32 %s1495_s19, 4  ;;  %s1321_s16 = int_to_ptr.vmem [resolvable:$false] %s1320_s16 }
  0x52   : > { %s1322_s27 = scalar_lea.vmem %s1321_s16, 256  ;;  %p1323_p8 = scmp.lt.s32.totalorder %s385_s1, %s1321_s16 }
  0x53   : > { %p1318_p9 = pnand %p1316_p2, %p1272_p5  ;;  %p1324_p7 = scmp.lt.s32.totalorder %s1322_s27, %s1315_s25 }
  0x55   : > { %p1319_p12 = pneg %p1318_p9  ;;  %p1325_p4 = por %p1324_p7, %p1323_p8 }
  0x57   : > { %p1326_p6 = pnand %p1325_p4, %p1319_p12 }
  0x59   : > { %1329 = shalt.err (!%p1326_p6)
}
  0x5a   : > { %1174 = dma.hbm_to_vmem [thread:$0]  (!%p1654_p0), %s1699_s14, 128, %s385_s1, %s372_s5  }
  0x5b   : > { %p1932_p13 = scmp.ne.s32.totalorder %s1929_s23, 0 }
  0x5c   : > { %s1726_s22 = sand.u32 (!%p1932_p13), 1, %s1468_s28   ;;  %p1933_p8 = scmp.ne.s32.totalorder (!%p1932_p13), %s1921_s20, 0 }
  0x5d   : > { %407 = sbr.rel (%p1932_p13) target bundleno = 874 (0x36a), region = 40  ;;  %s1729_s17 = sshll.u32 (!%p1932_p13), %s1726_s22, 3 }
  0x5e   : > { %s410_s11 = scalar_lea.sflag (!%p1932_p13), [#allocation3], %s1726_s22  ;;  %s413_s18 = scalar_lea.vmem (!%p1932_p13), [#allocation2], %s1729_s17 }
  0x64   : > { %1447 = dma.done.wait (%p1933_p8), %s410_s11, 128  }
  0x65   : > { %1449 = vsyncadd (%p1933_p8), %s410_s11, 4294967168  ;;  %s419_s1 = scalar_lea.sflag [#allocation6], %s1726_s22  ;;  %s422_s15 = scalar_lea.vmem [#allocation5], %s1729_s17 }
  0x66   : > { %1451 = dma.done.wait (%p1933_p8), %s419_s1, 128  }
  0x67   : > { %1453 = vsyncadd (%p1933_p8), %s419_s1, 4294967168  ;;  %p507_p0 = scmp.lt.s32.totalorder %s1480_s9, 1  ;;  %p509_p5 = scmp.lt.s32.totalorder %s1476_s30, 1  ;;  %v1496_v0 = vmov 0.0   ;;  %vm1497_vm0 = vmmov 0   ;;  %vm547_vm1 = vcmask 130048  }
  0x68   : > { %1148 = vmatprep.subr.mxu0 %v1496_v0  ;;  %1150 = vmatprep.mubr.msk.f32.mxu0 %vm1497_vm0, %v1496_v0  ;;  %v545_v1 = vld [vmem:[%s413_s18] sm:$0xff]  ;;  %vm749_vm2 = vcmask 7168   ;;  %vm627_vm3 = vcmask 64512   ;;  %v546_v25 = vld [vmem:[%s422_s15] sm:$0xff]  ;;  %v1498_v26 = vmov 0   ;;  %s486_s15 = scalar_lea.vmem [#allocation8], %s1729_s17 }
  0x69   : > { %s508_s23 = scalar_select %p507_p0, %s1480_s9, 1  ;;  %1153 = vmatprep.subr.mxu1 %v1496_v0  ;;  %1155 = vmatprep.mubr.msk.f32.mxu1 %vm1497_vm0, %v1496_v0  ;;  %v625_v15 = vld [vmem:[%s1898_s4] sm:$0xff]  ;;  %v1131_v36 = vld [vmem:[%s1898_s4 + $0x8] sm:$0xff] }
  0x6a   : > { %s510_s14 = scalar_select %p509_p5, %s1476_s30, 1  ;;  %1149 = vmatpush3.xpose.msk.msra.mxu0 %vm547_vm1, %v545_v1  ;;  %1154 = vmatpush3.msra.mxu1 %v546_v25 }
  0x6b   : > { %s1122_s5 = sshll.u32 %s508_s23, 1  ;;  %1254 = vset.pattern.permute.xlu1 %v1498_v26  ;;  %1255 = vset.pattern.permute.xlu0 %v1498_v26  ;;  %s493_s19 = scalar_lea.vmem [#allocation10], %s1729_s17 }
  0x6c   : > { %s515_s24 = sadd.s32 %s1122_s5, %s510_s14  ;;  %s756_s11 = sand.u32 1, %s1588_s13  }
  0x6d   : > { %s1123_s25 = sshll.u32 %s515_s24, 3  ;;  %s805_s5 = sshll.u32 %s486_s15, 4  ;;  %s806_s5 = int_to_ptr.vmem [resolvable:$true] %s805_s5 }
  0x6e   : > { %s517_s16 = scalar_lea.vmem %s1894_s0, %s1123_s25  ;;  %s528_s1 = scalar_lea.vmem %s1897_s3, %s1123_s25 }
  0x6f   : > { %v544_v2 = vld [vmem:[%s517_s16] sm:$0xff]  ;;  %s543_s14 = scalar_lea.vmem %s1902_s8, %s1123_s25  ;;  %s1136_s16 = sshll.u32 %s1480_s9, 1 }
  0x70   : > { %v642_v3 = vld [vmem:[%s528_s1] sm:$0xff]  ;;  %1151 = vmatmul.mubr.msk.f32.vlgmr.msra.gmra.mrb[0].mxu0 %vm547_vm1, %v544_v2  ;;  %s785_s27 = sadd.s32 %s1476_s30, %s1136_s16  ;;  %s1786_s24 = scalar_lea.sflag [#allocation9], %s756_s11 }
  0x71   : > { %v643_v4 = vmul.f32 -5.0, %v642_v3  ;;  %s1778_s1 = sshll.u32 %s785_s27, 7  ;;  %s1330_s25 = scalar_lea.vmem %s806_s5, 128 }
  0x72   : > { %p1331_p7 = scmp.ne.s32.totalorder %s806_s5, %s1330_s25  ;;  %p1934_p3 = scmp.ne.s32.totalorder %s1922_s21, 0 }
  0x73   : > { %v644_v5 = vmul.f32 1.442695, %v643_v4  ;;  %s1499_s9 = smov [#allocation8]  }
  0x74   : > { %p1332_p10 = pnand %p1331_p7, %p1934_p3  ;;  %s1334_s30 = sshll.u32 %s1499_s9, 4  ;;  %s1335_s30 = int_to_ptr.vmem [resolvable:$false] %s1334_s30 }
  0x75   : > { %1256 = vpow2.f32 %v644_v5  ;;  %s1336_s13 = scalar_lea.vmem %s1335_s30, 256  ;;  %p1337_p1 = scmp.lt.s32.totalorder %s806_s5, %s1335_s30 }
  0x76   : > { %p1333_p11 = pneg %p1332_p10  ;;  %p1338_p2 = scmp.lt.s32.totalorder %s1336_s13, %s1330_s25 }
  0x78   : > { %p1339_p9 = por %p1338_p2, %p1337_p1 }
  0x7a   : > { %p1340_p12 = pnand %p1339_p9, %p1333_p11 }
  0x7f   : > { %v1257_v6 = vpop.eup %1256 }
  0x80   : > { %v646_v7 = vadd.f32 1.0, %v1257_v6 }
  0x82   : > { %1258 = vrcp.f32 %v646_v7 }
  0x8c   : > { %v1259_v8 = vpop.eup %1258 }
  0x8d   : > { %v649_v9 = vadd.f32 1e-05, %v1259_v8 }
  0x8f   : > { %v650_v10 = vmul.f32 1.0986123, %v649_v9 }
  0x91   : > { %v651_v11 = vmul.f32 1.442695, %v650_v10 }
  0x93   : > { %1260 = vpow2.f32 %v651_v11 }
  0x9d   : > { %v1261_v12 = vpop.eup %1260 }
  0x9e   : > { %v1130_v13 = vadd.f32 -1.0, %v1261_v12 }
  0xa0   : > { %750 = vst.msk [vmem:[%s543_s14] sm:$0xff] %vm749_vm2, %v1130_v13  ;;  %s1784_s14 = scalar_lea.hbm %s1900_s6, %s1778_s1 }
 0x143   : > { %v620_v14 = vpop.f32.mrb[0].mxu0 }
 0x144   : > { %v624_v16 = vmul.f32 0.25, %v620_v14  ;;  %v1152_v17 = vpop.f32.mrb[1].mxu0 }
 0x146   : > { %v626_v18 = vadd.f32 %v625_v15, %v624_v16 }
 0x148   : > { %v628_v19 = vsel %vm627_vm3, %v626_v18, -inf }
 0x149   : > { %629 = vmax.xlane.f32.xlu0 %v628_v19 }
 0x1d6   : > { %v630_v20 = vpop.xlane.xlu0 %629 }
 0x1d7   : > { %v631_v21 = vsub.f32 %v626_v18, %v630_v20 }
 0x1d9   : > { %v632_v22 = vmul.f32 1.442695, %v631_v21 }
 0x1db   : > { %1262 = vpow2.f32 %v632_v22 }
 0x1dc   : > { %1264 = vrcp.f32 %v1130_v13 }
 0x1e5   : > { %v1263_v23 = vpop.eup %1262 }
 0x1e6   : > { %v634_v24 = vsel %vm627_vm3, %v1263_v23, 0.0  ;;  %v1265_v27 = vpop.eup %1264 }
 0x1e7   : > { %635 = vadd.xlane.f32.xlu0 %v634_v24  ;;  %v655_v28 = vmul.f32 %v1265_v27, %v1265_v27  ;;  %v656_v29 = vmul.f32 0.3989423, %v1265_v27 }
 0x1e9   : > { %661 = vperm.xlu1 %1254, %v655_v28  }
 0x1ed   : > { %669 = vperm.xlu1 %1254, %v656_v29  }
 0x268   : > { %v662_v37 = vpop.permute.xlu1 %661 }
 0x269   : > { %v664_v38 = vmul.f32 %v1131_v36, %v662_v37 }
 0x26b   : > { %v665_v39 = vmul.f32 1.442695, %v664_v38 }
 0x26c   : > { %v670_v41 = vpop.permute.xlu1 %669 }
 0x274   : > { %v636_v30 = vpop.xlane.xlu0 %635 }
 0x275   : > { %1266 = vrcp.f32 %v636_v30 }
 0x276   : > { %1268 = vpow2.f32 %v665_v39 }
 0x27f   : > { %v1267_v31 = vpop.eup %1266 }
 0x280   : > { %v638_v32 = vmul.f32 %v1267_v31, %v636_v30  ;;  %v1269_v40 = vpop.eup %1268 }
 0x281   : > { %v672_v42 = vmul.f32 %v1269_v40, %v670_v41 }
 0x282   : > { %v639_v33 = vsub.f32 2.0, %v638_v32 }
 0x283   : > { %748 = vst.msk [vmem:[%s493_s19] sm:$0xff] %vm627_vm3, %v672_v42 }
 0x284   : > { %v640_v34 = vmul.f32 %v1267_v31, %v639_v33 }
 0x286   : > { %v641_v35 = vmul.f32 %v1263_v23, %v640_v34 }
 0x288   : > { %1156 = vmatmul.mubr.msk.f32.vlgmr.msra.gmra.mrb[0].mxu1 %vm627_vm3, %v641_v35  ;;  %747 = vst.msk [vmem:[%s486_s15] sm:$0xff] %vm627_vm3, %v641_v35 }
 0x289   : > { %1343 = shalt.err (!%p1340_p12)
}
 0x28a   : > { %s1344_s15 = scalar_lea.hbm %s1784_s14, 128  ;;  %s1348_s27 = scalar_lea.hbm %s1900_s6, 512 }
 0x28b   : > { %p1345_p4 = scmp.ne.s32.totalorder %s1784_s14, %s1344_s15  ;;  %p1349_p8 = scmp.lt.u32.totalorder %s1784_s14, %s1900_s6 }
 0x28c   : > { %p1350_p0 = scmp.lt.u32.totalorder %s1348_s27, %s1344_s15  ;;  %p1352_p7 = scmp.lt.u32.totalorder %s1344_s15, %s1784_s14 }
 0x28d   : > { %p1346_p6 = pnand %p1345_p4, %p1934_p3 }
 0x28e   : > { %p1351_p5 = por %p1350_p0, %p1349_p8 }
 0x28f   : > { %p1347_p13 = pneg %p1346_p6 }
 0x290   : > { %p1353_p10 = por %p1352_p7, %p1351_p5 }
 0x292   : > { %p1354_p11 = pnand %p1353_p10, %p1347_p13 }
 0x294   : > { %1357 = shalt.err (!%p1354_p11)
}
 0x295   : > { %1163 = dma.vmem_to_hbm [thread:$0]  (%p1934_p3), %s806_s5, 128, %s1784_s14, %s1786_s24  }
 0x296   : > { %s1810_s9 = scalar_lea.hbm %s1901_s7, %s1778_s1  ;;  %s821_s30 = sshll.u32 %s493_s19, 4  ;;  %s822_s30 = int_to_ptr.vmem [resolvable:$true] %s821_s30 }
 0x297   : > { %s1358_s13 = scalar_lea.vmem %s822_s30, 128  ;;  %s1500_s15 = smov [#allocation10]  }
 0x298   : > { %p1359_p1 = scmp.ne.s32.totalorder %s822_s30, %s1358_s13  ;;  %s1362_s20 = sshll.u32 %s1500_s15, 4  ;;  %s1363_s20 = int_to_ptr.vmem [resolvable:$false] %s1362_s20 }
 0x299   : > { %s1364_s16 = scalar_lea.vmem %s1363_s20, 256  ;;  %p1365_p12 = scmp.lt.s32.totalorder %s822_s30, %s1363_s20 }
 0x29a   : > { %p1360_p2 = pnand %p1359_p1, %p1934_p3  ;;  %p1366_p4 = scmp.lt.s32.totalorder %s1364_s16, %s1358_s13 }
 0x29c   : > { %p1361_p9 = pneg %p1360_p2  ;;  %p1367_p6 = por %p1366_p4, %p1365_p12 }
 0x29e   : > { %p1368_p13 = pnand %p1367_p6, %p1361_p9 }
 0x2a0   : > { %1371 = shalt.err (!%p1368_p13)
}
 0x2a1   : > { %s1372_s19 = scalar_lea.hbm %s1810_s9, 128  ;;  %s1376_s27 = scalar_lea.hbm %s1901_s7, 512 }
 0x2a2   : > { %p1373_p8 = scmp.ne.s32.totalorder %s1810_s9, %s1372_s19  ;;  %p1377_p7 = scmp.lt.u32.totalorder %s1810_s9, %s1901_s7 }
 0x2a3   : > { %p1378_p10 = scmp.lt.u32.totalorder %s1376_s27, %s1372_s19  ;;  %p1380_p1 = scmp.lt.u32.totalorder %s1372_s19, %s1810_s9 }
 0x2a4   : > { %p1374_p0 = pnand %p1373_p8, %p1934_p3 }
 0x2a5   : > { %p1379_p11 = por %p1378_p10, %p1377_p7 }
 0x2a6   : > { %p1375_p5 = pneg %p1374_p0 }
 0x2a7   : > { %p1381_p2 = por %p1380_p1, %p1379_p11 }
 0x2a9   : > { %p1382_p9 = pnand %p1381_p2, %p1375_p5 }
 0x2ab   : > { %1385 = shalt.err (!%p1382_p9)
}
 0x2ac   : > { %1164 = dma.vmem_to_hbm [thread:$0]  (%p1934_p3), %s822_s30, 128, %s1810_s9, %s1786_s24  }
 0x2ad   : > { %s479_s23 = scalar_lea.vmem [#allocation7], %s1729_s17  ;;  %s1935_s20 = sld [smem:[#allocation21_spill]] }
 0x2ae   : > { %s789_s25 = sshll.u32 %s479_s23, 4  ;;  %s752_s19 = scalar_lea.sflag [#allocation4], %s1726_s22  ;;  %s1839_s25 = int_to_ptr.vmem [resolvable:$true] %s789_s25 }
 0x2af   : > { %s1386_s14 = scalar_lea.vmem %s1839_s25, 128  ;;  %s1501_s17 = smov [#allocation7]  }
 0x2b0   : > { %p1387_p12 = scmp.ne.s32.totalorder %s1839_s25, %s1386_s14  ;;  %s1390_s24 = sshll.u32 %s1501_s17, 4  ;;  %s1391_s24 = int_to_ptr.vmem [resolvable:$false] %s1390_s24 }
 0x2b1   : > { %p1393_p13 = scmp.lt.s32.totalorder %s1839_s25, %s1391_s24 }
 0x2b2   : > { %p1388_p4 = pnand %p1387_p12, %p1934_p3 }
 0x2b3   : > { %s1837_s16 = scalar_lea.hbm %s1935_s20, %s1778_s1  ;;  %s1392_s1 = scalar_lea.vmem %s1391_s24, 256 }
 0x2b4   : > { %p1389_p6 = pneg %p1388_p4  ;;  %p1394_p8 = scmp.lt.s32.totalorder %s1392_s1, %s1386_s14 }
 0x2b6   : > { %p1395_p0 = por %p1394_p8, %p1393_p13 }
 0x2b8   : > { %p1396_p5 = pnand %p1395_p0, %p1389_p6 }
 0x35b   : > { %v742_v43 = vpop.f32.mrb[0].mxu1 }
 0x35c   : > { %746 = vst.msk [vmem:[%s479_s23] sm:$0xff] %vm547_vm1, %v742_v43  ;;  %v1157_v44 = vpop.f32.mrb[1].mxu1 }
 0x35d   : > { %1399 = shalt.err (!%p1396_p5)
}
 0x35e   : > { %s1400_s22 = scalar_lea.hbm %s1837_s16, 128  ;;  %s1404_s5 = scalar_lea.hbm %s1935_s20, 512 }
 0x35f   : > { %p1401_p7 = scmp.ne.s32.totalorder %s1837_s16, %s1400_s22  ;;  %p1405_p1 = scmp.lt.u32.totalorder %s1837_s16, %s1935_s20 }
 0x360   : > { %p1406_p2 = scmp.lt.u32.totalorder %s1404_s5, %s1400_s22  ;;  %p1408_p12 = scmp.lt.u32.totalorder %s1400_s22, %s1837_s16 }
 0x361   : > { %p1402_p10 = pnand %p1401_p7, %p1934_p3 }
 0x362   : > { %p1407_p9 = por %p1406_p2, %p1405_p1 }
 0x363   : > { %p1403_p11 = pneg %p1402_p10 }
 0x364   : > { %p1409_p4 = por %p1408_p12, %p1407_p9 }
 0x366   : > { %p1410_p6 = pnand %p1409_p4, %p1403_p11 }
 0x368   : > { %1413 = shalt.err (!%p1410_p6)
}
 0x369   : > { %1162 = dma.vmem_to_hbm [thread:$0]  (%p1934_p3), %s1839_s25, 128, %s1837_s16, %s752_s19  }
 0x36a PF: > { %s1936_s18 = sld [smem:[#allocation15_spill]]  ;;  %s1937_s23 = sld [smem:[#allocation19_spill]] }
 0x36b   : > { %p1186_p13 = scmp.ge.s32.totalorder %s1492_s12, 2 }
 0x370   : > { %s836_s13 = sand.u32 1, %s1936_s18   ;;  %p1938_p8 = scmp.ne.s32.totalorder %s1937_s23, 0 }
 0x371   : > { %s837_s15 = scalar_lea.sflag [#allocation4], %s836_s13 }
 0x372   : > { %p1176_p0 = pnand %p1186_p13, %p1938_p8 }
 0x374   : > { %1455 = dma.done.wait (!%p1176_p0), %s837_s15, 128  }
 0x375   : > { %1457 = vsyncadd (!%p1176_p0), %s837_s15, 4294967168  ;;  %s1939_s14 = sadd.s32 4294967294, %s1492_s12  }
 0x376   : > { %s845_s17 = sand.u32 1, %s1939_s14  }
 0x377   : > { %s846_s24 = scalar_lea.sflag [#allocation9], %s845_s17 }
 0x378   : > { %1459 = dma.done.wait (!%p1176_p0), %s846_s24, 256  }
 0x379   : > { %1461 = vsyncadd (!%p1176_p0), %s846_s24, 4294967040  ;;  %s31_s12 = sadd.s32 1, %s1492_s12   ;;  %s1940_s9 = sld [smem:[#allocation16_spill]] }
 0x37a   : > { %p28_p3 = scmp.ge.s32.totalorder %s31_s12, 6   ;;  %s1941_s21 = sld [smem:[#allocation17_spill]] }
 0x37b   : > { %s1942_s11 = sld [smem:[#allocation18_spill]]  ;;  %s1943_s27 = smov %s1468_s28 }
 0x37c   : > { %s1944_s28 = smov %s1472_s29  ;;  %s1945_s29 = smov %s1633_s26 }
 0x37d   : > { %s1946_s30 = smov %s1484_s10  ;;  %30 = sbr.rel (!%p28_p3) target bundleno = 14 (0xe), region = 152 }
 0x380   : > { %s1947_s10 = smov %s1941_s21 }
 0x384   :  { %874 = vsyncpa [#allocation3], 1 }
 0x385   :  { %876 = vsyncpa [#allocation3 + $0x1], 1 }
 0x386   :  { %877 = vsyncpa [#allocation6], 1 }
 0x387   :  { %879 = vsyncpa [#allocation6 + $0x1], 1 }
 0x388   :  { %880 = vsyncpa [#allocation4], 1 }
 0x389   :  { %882 = vsyncpa [#allocation4 + $0x1], 1 }
 0x38a   :  { %883 = vsyncpa [#allocation9], 1 }
 0x38b   :  { %885 = vsyncpa [#allocation9 + $0x1], 1 }

</bundles_post_ra>
